<compile_context>
chip_gen: v7x
topology: tpu7x:2x2x1
jax: 0.10.0
libtpu: 0.0.40
codegen_flags: <defaults>
</compile_context>

<pallas_src>
import jax
import jax.numpy as jnp
from jax.experimental import pallas as pl
from jax.experimental.pallas import tpu as pltpu


def _pair_max_kernel(a_ref, b_ref, o_ref):
    # a_ref / b_ref: (TR, Wo) tap planes (upper / lower row of each 2x2 window,
    # already max-reduced along W).  Full-block VPU max, lane-dense store.
    o_ref[...] = jnp.maximum(a_ref[...], b_ref[...])


def model_forward(x1, x2):
    """Reproduces Model.forward(x1, x2): flatten(maxpool2d(x2, 2), 1)."""
    del x1  # feeds only the dead (and non-constructible) conv/maxunpool branch

    N, C, H, W = x2.shape
    Ho, Wo = H // 2, W // 2  # MaxPool2d(2) floors odd trailing rows/cols
    if Ho == 0 or Wo == 0:
        return jnp.zeros((N, 0), dtype=x2.dtype)

    R = N * C * Ho
    itemsize = jnp.dtype(x2.dtype).itemsize

    # ---- fused XLA producer (ONE half-size pre-pass, no transpose) ----------
    # W-pair max per window row + even/odd H-row split; both taps together
    # read x2 exactly once and write |x2|/2 bytes.
    xc = x2[:, :, : 2 * Ho, : 2 * Wo]
    top = xc[:, :, 0::2, :]                      # upper row of each 2x2 window
    bot = xc[:, :, 1::2, :]                      # lower row of each 2x2 window
    we = jnp.maximum(top[..., 0::2], top[..., 1::2]).reshape(R, Wo)
    wo = jnp.maximum(bot[..., 0::2], bot[..., 1::2]).reshape(R, Wo)

    # ---- row tiling: multi-MB blocks, >=4 parallel steps on large inputs ----
    lane_padded = -(-Wo // 128) * 128            # VMEM pads the lane dim to 128
    row_bytes = lane_padded * itemsize
    TARGET_BLOCK_BYTES = 3 << 20                 # ~3 MiB per input block
    SMALL_BYTES = 1 << 20

    if R * row_bytes <= SMALL_BYTES:
        tr = R                                   # single step; block == array
    else:
        tr = max(8, (TARGET_BLOCK_BYTES // row_bytes) // 8 * 8)
        cap = (R // 4) // 8 * 8                  # keep >=4 grid steps (megacore)
        if cap >= 8:
            tr = min(tr, cap)
        tr = min(tr, R // 8 * 8)                 # multiple-of-8 sublane blocks
        if tr < 8:
            tr = R
    steps = pl.cdiv(R, tr)

    pooled = pl.pallas_call(
        _pair_max_kernel,
        out_shape=jax.ShapeDtypeStruct((R, Wo), x2.dtype),
        grid_spec=pltpu.PrefetchScalarGridSpec(
            num_scalar_prefetch=0,
            grid=(steps,),
            in_specs=[
                pl.BlockSpec((tr, Wo), lambda i: (i, 0)),
                pl.BlockSpec((tr, Wo), lambda i: (i, 0)),
            ],
            out_specs=pl.BlockSpec((tr, Wo), lambda i: (i, 0)),
        ),
        compiler_params=pltpu.CompilerParams(
            dimension_semantics=("arbitrary",) if steps == 1 else ("parallel",),
            vmem_limit_bytes=32 * 1024 * 1024,
        ),
    )(we, wo)

    # AvgPool2d(1) is identity; torch.flatten(v8, 1) -> (N, C*Ho*Wo)
    return pooled.reshape(N, C * Ho * Wo)


def _reference_forward(x2):
    """Pure-JAX reference of the live path: flatten(maxpool2d(x2, 2), 1)."""
    N, C, H, W = x2.shape
    r = x2[:, :, : (H // 2) * 2, : (W // 2) * 2]
    r = r.reshape(N, C, H // 2, 2, W // 2, 2).max(axis=(3, 5))
    return r.reshape(N, -1)


if __name__ == "__main__":
    key = jax.random.PRNGKey(0)
    k1, k2 = jax.random.split(key)
    # Shapes implied by the module's test inputs.
    x1 = jax.random.normal(k1, (1, 96, 16, 16), dtype=jnp.float32)
    x2 = jax.random.normal(k2, (1, 24, 8, 8), dtype=jnp.float32)

    out = jax.block_until_ready(model_forward(x1, x2))

    ref = _reference_forward(x2)
    assert out.shape == (1, 24 * 4 * 4), out.shape
    assert jnp.allclose(out, ref), "mismatch vs reference max-pool"

    print("KERNEL_OK")
</pallas_src>

<mosaic_0001>
module attributes {stable_mosaic.version = 11 : i64} {
  func.func @_pair_max_kernel(%arg0: i32, %arg1: memref<96x4xf32, #tpu.memory_space<vmem>>, %arg2: memref<96x4xf32, #tpu.memory_space<vmem>>, %arg3: memref<96x4xf32, #tpu.memory_space<vmem>>) attributes {dimension_semantics = [#tpu.dimension_semantics<arbitrary>], iteration_bounds = array<i64: 1>, scalar_prefetch = 0 : i64, scratch_operands = 0 : i64, tpu.core_type = #tpu.core_type<tc>, window_params = [{transform_indices = @transform_0, window_bounds = array<i64: 96, 4>}, {transform_indices = @transform_1, window_bounds = array<i64: 96, 4>}, {transform_indices = @transform_2, window_bounds = array<i64: 96, 4>}]} {
    %c0 = arith.constant 0 : index
    %c0_0 = arith.constant 0 : index
    %0 = vector.load %arg1[%c0, %c0_0] : memref<96x4xf32, #tpu.memory_space<vmem>>, vector<96x4xf32>
    %c0_1 = arith.constant 0 : index
    %c0_2 = arith.constant 0 : index
    %1 = vector.load %arg2[%c0_1, %c0_2] : memref<96x4xf32, #tpu.memory_space<vmem>>, vector<96x4xf32>
    %2 = arith.maximumf %0, %1 : vector<96x4xf32>
    %c0_3 = arith.constant 0 : index
    %c0_4 = arith.constant 0 : index
    %3 = vector.load %arg3[%c0_3, %c0_4] : memref<96x4xf32, #tpu.memory_space<vmem>>, vector<96x4xf32>
    tpu.vector_store %arg3[%c0_3, %c0_4], %2 {strides = array<i32>} : memref<96x4xf32, #tpu.memory_space<vmem>>, vector<96x4xf32>,
    return
  }
  func.func @transform_0(%arg0: i32) -> (i32, i32) {
    %c0_i32 = arith.constant 0 : i32
    %c0_i32_0 = arith.constant 0 : i32
    return %arg0, %c0_i32 : i32, i32
  }
  func.func @transform_1(%arg0: i32) -> (i32, i32) {
    %c0_i32 = arith.constant 0 : i32
    %c0_i32_0 = arith.constant 0 : i32
    return %arg0, %c0_i32 : i32, i32
  }
  func.func @transform_2(%arg0: i32) -> (i32, i32) {
    %c0_i32 = arith.constant 0 : i32
    %c0_i32_0 = arith.constant 0 : i32
    return %arg0, %c0_i32 : i32, i32
  }
}

</mosaic_0001>

<bundles_post_ra>
// kernel: tpu_custom_call.1
= control target key start
LH: loop header
LB: loop body
LE: loop exit
PB: predicated region body
PF: predicated region fallthrough
CT: control target
= control target key end

     0   :  { %vm47_vm0 = vcmask 31744   ;;  %s199_s0 = inlined_call_operand.vmem [shape: f32[96,4], index: 0, kind: input, shape index: {}]   ;;  %s200_s1 = inlined_call_operand.vmem [shape: f32[96,4], index: 1, kind: input, shape index: {}]   ;;  %s201_s2 = inlined_call_operand.vmem [shape: f32[96,4], index: 2, kind: output, shape index: {}]  }
   0x1   :  { %v11_v0 = vld [vmem:[%s199_s0] sm:$0xff]  ;;  %v12_v2 = vld [vmem:[%s199_s0 + $0x8] sm:$0xff]  ;;  %v13_v5 = vld [vmem:[%s199_s0 + $0x10] sm:$0xff] }
   0x2   :  { %v23_v1 = vld [vmem:[%s200_s1] sm:$0xff]  ;;  %v24_v4 = vld [vmem:[%s200_s1 + $0x8] sm:$0xff]  ;;  %v25_v6 = vld [vmem:[%s200_s1 + $0x10] sm:$0xff] }
   0x3   :  { %v35_v3 = vmax.f32 %v11_v0, %v23_v1  ;;  %v36_v7 = vmax.f32 %v12_v2, %v24_v4  ;;  %v37_v8 = vmax.f32 %v13_v5, %v25_v6  ;;  %v14_v9 = vld [vmem:[%s199_s0 + $0x18] sm:$0xff]  ;;  %v15_v11 = vld [vmem:[%s199_s0 + $0x20] sm:$0xff]  ;;  %v16_v14 = vld [vmem:[%s199_s0 + $0x28] sm:$0xff] }
   0x4   :  { %v26_v10 = vld [vmem:[%s200_s1 + $0x18] sm:$0xff]  ;;  %v27_v13 = vld [vmem:[%s200_s1 + $0x20] sm:$0xff]  ;;  %v28_v15 = vld [vmem:[%s200_s1 + $0x28] sm:$0xff] }
   0x5   :  { %48 = vst.msk [vmem:[%s201_s2] sm:$0xff] %vm47_vm0, %v35_v3  ;;  %v38_v12 = vmax.f32 %v14_v9, %v26_v10  ;;  %49 = vst.msk [vmem:[%s201_s2 + $0x8] sm:$0xff] %vm47_vm0, %v36_v7  ;;  %v39_v16 = vmax.f32 %v15_v11, %v27_v13  ;;  %v40_v17 = vmax.f32 %v16_v14, %v28_v15  ;;  %v17_v18 = vld [vmem:[%s199_s0 + $0x30] sm:$0xff]  ;;  %v18_v20 = vld [vmem:[%s199_s0 + $0x38] sm:$0xff] }
   0x6   :  { %50 = vst.msk [vmem:[%s201_s2 + $0x10] sm:$0xff] %vm47_vm0, %v37_v8  ;;  %v29_v19 = vld [vmem:[%s200_s1 + $0x30] sm:$0xff]  ;;  %v30_v22 = vld [vmem:[%s200_s1 + $0x38] sm:$0xff]  ;;  %v19_v23 = vld [vmem:[%s199_s0 + $0x40] sm:$0xff] }
   0x7   :  { %51 = vst.msk [vmem:[%s201_s2 + $0x18] sm:$0xff] %vm47_vm0, %v38_v12  ;;  %v41_v21 = vmax.f32 %v17_v18, %v29_v19  ;;  %v31_v24 = vld [vmem:[%s200_s1 + $0x40] sm:$0xff]  ;;  %52 = vst.msk [vmem:[%s201_s2 + $0x20] sm:$0xff] %vm47_vm0, %v39_v16  ;;  %v42_v25 = vmax.f32 %v18_v20, %v30_v22  ;;  %v20_v27 = vld [vmem:[%s199_s0 + $0x48] sm:$0xff] }
   0x8   :  { %53 = vst.msk [vmem:[%s201_s2 + $0x28] sm:$0xff] %vm47_vm0, %v40_v17  ;;  %v43_v26 = vmax.f32 %v19_v23, %v31_v24  ;;  %v32_v28 = vld [vmem:[%s200_s1 + $0x48] sm:$0xff]  ;;  %v21_v29 = vld [vmem:[%s199_s0 + $0x50] sm:$0xff]  ;;  %v22_v32 = vld [vmem:[%s199_s0 + $0x58] sm:$0xff] }
   0x9   :  { %54 = vst.msk [vmem:[%s201_s2 + $0x30] sm:$0xff] %vm47_vm0, %v41_v21  ;;  %v44_v30 = vmax.f32 %v20_v27, %v32_v28  ;;  %v33_v31 = vld [vmem:[%s200_s1 + $0x50] sm:$0xff]  ;;  %v34_v33 = vld [vmem:[%s200_s1 + $0x58] sm:$0xff]  ;;  %55 = vst.msk [vmem:[%s201_s2 + $0x38] sm:$0xff] %vm47_vm0, %v42_v25 }
   0xa   :  { %56 = vst.msk [vmem:[%s201_s2 + $0x40] sm:$0xff] %vm47_vm0, %v43_v26  ;;  %v45_v34 = vmax.f32 %v21_v29, %v33_v31  ;;  %v46_v35 = vmax.f32 %v22_v32, %v34_v33 }
   0xb   :  { %57 = vst.msk [vmem:[%s201_s2 + $0x48] sm:$0xff] %vm47_vm0, %v44_v30 }
   0xc   :  { %58 = vst.msk [vmem:[%s201_s2 + $0x50] sm:$0xff] %vm47_vm0, %v45_v34  ;;  %59 = vst.msk [vmem:[%s201_s2 + $0x58] sm:$0xff] %vm47_vm0, %v46_v35 }

</bundles_post_ra>
